<compile_context>
chip_gen: v7x
topology: tpu7x:2x2x1
jax: 0.10.0
libtpu: 0.0.40
codegen_flags: <defaults>
</compile_context>

<pallas_src>
import functools

import jax
import jax.numpy as jnp
from jax.experimental import pallas as pl
from jax.experimental.pallas import tpu as pltpu


def mca_kernel(featT_ref, qry_ref, keep_ref,
               wf_ref, wqT_ref, bq_ref, wsel_ref,
               out_ref,
               *, block_b, num_q, num_items, attn_dim, matmul_dtype, tanh_dtype):
    Q, N, A = num_q, num_items, attn_dim

    # Weights: constant index_map -> DMA'd once, VMEM-resident across the grid.
    wf = wf_ref[...]        # (A, F)
    wqT = wqT_ref[...]      # (Qd, A)
    bq = bq_ref[...]        # (1, A)
    wsel = wsel_ref[...]    # (Q, Q*A)

    featT = featT_ref[0]    # (F, block_b*N)   feature, transposed + batch-packed
    qry = qry_ref[0]        # (block_b*Q, Qd)  query, batch-packed
    keep = keep_ref[0]      # (1, block_b*N)   int32 keep mask

    # One full-width MXU pass per projection for the whole batch tile.
    faT_all = jnp.dot(wf, featT, preferred_element_type=jnp.float32)       # (A, block_b*N)
    qa_all = jnp.dot(qry, wqT, preferred_element_type=jnp.float32) + bq    # (block_b*Q, A)

    score_dtype = tanh_dtype if tanh_dtype is not None else matmul_dtype
    wsel_mm = wsel if score_dtype is None else wsel.astype(score_dtype)

    # Static unroll over the (small) batch tile: all slices below are static.
    for b in range(block_b):
        fa_b = faT_all[:, b * N:(b + 1) * N]          # (A, N)
        qa_b = qa_all[b * Q:(b + 1) * Q, :]           # (Q, A)

        # Fused additive attention: one tanh tile over (Q, A, N), reduced over A
        # (and per-q selected) by ONE MXU matmul -> (Q, N) scores.
        e = fa_b[None, :, :] + qa_b[:, :, None]       # (Q, A, N)
        if tanh_dtype is not None:
            e = e.astype(tanh_dtype)                  # v6e/v7x: bf16 EUP tanh
        e = jnp.tanh(e)
        if score_dtype is not None and e.dtype != score_dtype:
            e = e.astype(score_dtype)                 # v5e: bf16 MXU operand only
        e = e.reshape(Q * A, N)                       # leading-dim merge only (A % 8 == 0)
        scores = jnp.dot(wsel_mm, e, preferred_element_type=jnp.float32)   # (Q, N)

        # Exact masked_fill(mask == 0, -1e9): a single select, broadcast over Q.
        keep_b = keep[:, b * N:(b + 1) * N]           # (1, N)
        scores = jnp.where(keep_b != 0, scores, -1000000000.0)

        # Softmax over the candidate axis (lanes).
        m = jnp.max(scores, axis=-1, keepdims=True)
        p = jnp.exp(scores - m)
        denom = jnp.sum(p, axis=-1, keepdims=True)
        alpha = p * pl.reciprocal(denom, approx=False)                     # (Q, N)

        # out = alpha @ feature, written as an rhs-transposed dot_general on the
        # single transposed feature stream:  (Q,N) x (F,N)^T -> (Q,F).
        featT_b = featT[:, b * N:(b + 1) * N]         # (F, N)
        if matmul_dtype is not None:
            featT_b = featT_b.astype(matmul_dtype)
            alpha = alpha.astype(matmul_dtype)
        out_b = jax.lax.dot_general(alpha, featT_b, (((1,), (1,)), ((), ())),
                                    preferred_element_type=jnp.float32)    # (Q, F)
        out_ref[0, b * Q:(b + 1) * Q, :] = out_b.astype(out_ref.dtype)


def multiple_candidate_attention(feature, query, wf, wq, bq, wa, mask=None,
                                 *, block_b=None, matmul_dtype=None, tanh_dtype=None):
    """feature (B,N,F), query (B,Q,Qd), wf (A,F), wq (A,Qd), bq (A,), wa (1,A)."""
    B, N, F = feature.shape
    _, Q, Qd = query.shape
    A = wf.shape[0]
    A_pad = ((A + 7) // 8) * 8       # sublane-align A so (Q,A,N)->(Q*A,N) is layout-free

    # block_b: amortize per-grid-step overhead, but keep grid >= 2 so both v7x
    # TensorCores get work (v5e/v6e have one TC; grid >= 2 costs ~nothing there).
    if block_b is None:
        block_b = 1
        for bt in (16, 8, 4, 2):
            if B % bt == 0 and B // bt >= 2:
                block_b = bt
                break
    assert B % block_b == 0, "block_b must divide the batch size"
    G = B // block_b

    f32 = jnp.float32
    # Zero-pad the attention dim; padded rows give tanh(0 + 0) = 0 * 0-weight = 0.
    wf_p = jnp.zeros((A_pad, F), f32).at[:A].set(wf.astype(f32))
    wq_p = jnp.zeros((A_pad, Qd), f32).at[:A].set(wq.astype(f32))
    bq_p = jnp.zeros((1, A_pad), f32).at[0, :A].set(bq.astype(f32))
    wa_p = jnp.zeros((A_pad,), f32).at[:A].set(wa.reshape(-1).astype(f32))
    # Per-candidate wa selection matrix: wsel[q, q*A_pad + a] = wa[a] (block-diag),
    # so  wsel @ tanh(...).reshape(Q*A_pad, N)  yields (Q, N) scores in one MXU pass.
    wsel = (jnp.eye(Q, dtype=f32)[:, :, None] * wa_p[None, None, :]).reshape(Q, Q * A_pad)
    wqT_p = wq_p.T                   # (Qd, A_pad): MXU-native for  qry @ Wq^T

    # One-time host-side packing (XLA): the kernel never transposes activations.
    #   featT_packed[g, f, b*N + n] = feature[g*block_b + b, n, f]
    #   qry_packed [g, b*Q + q, :]  = query  [g*block_b + b, q, :]
    featT_packed = (feature.astype(f32).reshape(G, block_b, N, F)
                    .transpose(0, 3, 1, 2).reshape(G, F, block_b * N))
    qry_packed = query.astype(f32).reshape(G, block_b * Q, Qd)

    if mask is None:
        keep = jnp.ones((G, 1, block_b * N), jnp.int32)
    else:
        keep = (mask.reshape(G, 1, block_b * N) != 0).astype(jnp.int32)

    if matmul_dtype is not None:     # v5e path: cast MXU operands only, f32 accumulation
        featT_packed = featT_packed.astype(matmul_dtype)
        qry_packed = qry_packed.astype(matmul_dtype)
        wf_p = wf_p.astype(matmul_dtype)
        wqT_p = wqT_p.astype(matmul_dtype)

    # Explicit VMEM budget from the real per-step footprint (+ headroom), never
    # below the 32 MiB scoped default so small problems keep compiling everywhere.
    isz = 4
    per_step = block_b * (F * N + Q * Qd + N + Q * F) * isz          # streamed in + out
    resident = (A_pad * F + A_pad * Qd + A_pad + Q * Q * A_pad) * isz
    vmem_limit = int(min(max(32 << 20, 4 * (2 * per_step) + resident), 100 << 20))

    flops = 2 * B * (A_pad * F * N + Q * Qd * A_pad + Q * Q * A_pad * N + Q * N * F) + 5 * B * Q * N
    transcendentals = B * Q * A_pad * N + B * Q * N
    bytes_accessed = int(featT_packed.size * featT_packed.dtype.itemsize
                         + qry_packed.size * qry_packed.dtype.itemsize
                         + keep.size * 4 + B * Q * F * isz
                         + (wf_p.size + wqT_p.size + bq_p.size + wsel.size) * isz)

    kernel = functools.partial(
        mca_kernel, block_b=block_b, num_q=Q, num_items=N, attn_dim=A_pad,
        matmul_dtype=matmul_dtype, tanh_dtype=tanh_dtype)

    out_packed = pl.pallas_call(
        kernel,
        out_shape=jax.ShapeDtypeStruct((G, block_b * Q, F), feature.dtype),
        grid=(G,),
        in_specs=[
            pl.BlockSpec((1, F, block_b * N), lambda i: (i, 0, 0)),    # feature^T (packed)
            pl.BlockSpec((1, block_b * Q, Qd), lambda i: (i, 0, 0)),   # query (packed)
            pl.BlockSpec((1, 1, block_b * N), lambda i: (i, 0, 0)),    # keep mask
            pl.BlockSpec((A_pad, F), lambda i: (0, 0)),                # Wf    (resident)
            pl.BlockSpec((Qd, A_pad), lambda i: (0, 0)),               # Wq^T  (resident)
            pl.BlockSpec((1, A_pad), lambda i: (0, 0)),                # bq    (resident)
            pl.BlockSpec((Q, Q * A_pad), lambda i: (0, 0)),            # Wsel  (resident)
        ],
        out_specs=pl.BlockSpec((1, block_b * Q, F), lambda i: (i, 0, 0)),
        compiler_params=pltpu.CompilerParams(
            dimension_semantics=("parallel",),       # shards batch tiles over 2 TCs on v7x
            vmem_limit_bytes=vmem_limit),
        cost_estimate=pl.CostEstimate(flops=int(flops),
                                      transcendentals=int(transcendentals),
                                      bytes_accessed=int(bytes_accessed)),
    )(featT_packed, qry_packed, keep, wf_p, wqT_p, bq_p, wsel)

    return out_packed.reshape(B, Q, F)


def reference_forward(feature, query, wf, wq, bq, wa, mask=None):
    """Pure-JAX mirror of the PyTorch forward for verification."""
    fa = jnp.einsum('bnf,af->bna', feature, wf)
    qa = jnp.einsum('bqd,ad->bqa', query, wq) + bq
    e = jnp.tanh(fa[:, None, :, :] + qa[:, :, None, :])          # (B, Q, N, A)
    a = jnp.einsum('bqna,a->bqn', e, wa.reshape(-1))
    if mask is not None:
        a = jnp.where(mask[:, None, :] == 0, -1000000000.0, a)
    alpha = jax.nn.softmax(a, axis=2)
    return jnp.einsum('bqn,bnf->bqf', alpha, feature)


if __name__ == "__main__":
    # Small deterministic problem
    B, N, Q = 2, 16, 8
    feature_dim, query_dim, attention_dim = 32, 24, 32

    key = jax.random.PRNGKey(0)
    k1, k2, k3, k4, k5, k6 = jax.random.split(key, 6)

    feature = jax.random.normal(k1, (B, N, feature_dim), dtype=jnp.float32)
    query = jax.random.normal(k2, (B, Q, query_dim), dtype=jnp.float32)
    # mask: mostly ones, some zeros (mask==0 means "masked out")
    mask = (jax.random.uniform(k3, (B, N)) > 0.2).astype(jnp.float32)

    # Deterministic parameter init (shapes follow nn.Linear: out_features x in_features)
    wf = jax.random.normal(k4, (attention_dim, feature_dim), dtype=jnp.float32) * 0.1
    wq = jax.random.normal(k5, (attention_dim, query_dim), dtype=jnp.float32) * 0.1
    bq = jnp.zeros((attention_dim,), dtype=jnp.float32)
    wa = jax.random.normal(k6, (1, attention_dim), dtype=jnp.float32) * 0.1

    # f32 end-to-end for the strict 1e-5 check; on v6e/v7x pass tanh_dtype=bf16
    # (EUP-bound) and on v5e pass matmul_dtype=bf16 (MXU-bound) for production.
    out = multiple_candidate_attention(feature, query, wf, wq, bq, wa, mask=mask)
    out = jax.block_until_ready(out)

    ref = reference_forward(feature, query, wf, wq, bq, wa, mask=mask)
    assert out.shape == (B, Q, feature_dim)
    assert jnp.allclose(out, ref, atol=1e-5, rtol=1e-5), "mismatch vs reference"

    # also exercise the mask=None path (same as torch default)
    out2 = jax.block_until_ready(
        multiple_candidate_attention(feature, query, wf, wq, bq, wa))
    ref2 = reference_forward(feature, query, wf, wq, bq, wa)
    assert jnp.allclose(out2, ref2, atol=1e-5, rtol=1e-5), "mismatch vs reference (no mask)"

    print("KERNEL_OK")
</pallas_src>

<mosaic_0001>
module attributes {stable_mosaic.version = 11 : i64} {
  func.func @mca_kernel(%arg0: i32, %arg1: memref<1x32x16xf32, #tpu.memory_space<vmem>>, %arg2: memref<1x8x24xf32, #tpu.memory_space<vmem>>, %arg3: memref<1x1x16xi32, #tpu.memory_space<vmem>>, %arg4: memref<32x32xf32, #tpu.memory_space<vmem>>, %arg5: memref<24x32xf32, #tpu.memory_space<vmem>>, %arg6: memref<1x32xf32, #tpu.memory_space<vmem>>, %arg7: memref<8x256xf32, #tpu.memory_space<vmem>>, %arg8: memref<1x8x32xf32, #tpu.memory_space<vmem>>) attributes {dimension_semantics = [#tpu.dimension_semantics<parallel>], iteration_bounds = array<i64: 2>, scalar_prefetch = 0 : i64, scratch_operands = 0 : i64, tpu.core_type = #tpu.core_type<tc>, window_params = [{transform_indices = @transform_0, window_bounds = array<i64: 1, 32, 16>}, {transform_indices = @transform_1, window_bounds = array<i64: 1, 8, 24>}, {transform_indices = @transform_2, window_bounds = array<i64: 1, 1, 16>}, {pipeline_mode = #tpu.pipeline_mode<synchronous>, transform_indices = @transform_3, window_bounds = array<i64: 32, 32>}, {pipeline_mode = #tpu.pipeline_mode<synchronous>, transform_indices = @transform_4, window_bounds = array<i64: 24, 32>}, {pipeline_mode = #tpu.pipeline_mode<synchronous>, transform_indices = @transform_5, window_bounds = array<i64: 1, 32>}, {pipeline_mode = #tpu.pipeline_mode<synchronous>, transform_indices = @transform_6, window_bounds = array<i64: 8, 256>}, {transform_indices = @transform_7, window_bounds = array<i64: 1, 8, 32>}]} {
    %c0 = arith.constant 0 : index
    %c0_0 = arith.constant 0 : index
    %0 = vector.load %arg4[%c0, %c0_0] : memref<32x32xf32, #tpu.memory_space<vmem>>, vector<32x32xf32>
    %c0_1 = arith.constant 0 : index
    %c0_2 = arith.constant 0 : index
    %1 = vector.load %arg5[%c0_1, %c0_2] : memref<24x32xf32, #tpu.memory_space<vmem>>, vector<24x32xf32>
    %c0_3 = arith.constant 0 : index
    %c0_4 = arith.constant 0 : index
    %2 = vector.load %arg6[%c0_3, %c0_4] : memref<1x32xf32, #tpu.memory_space<vmem>>, vector<1x32xf32>
    %c0_5 = arith.constant 0 : index
    %c0_6 = arith.constant 0 : index
    %3 = vector.load %arg7[%c0_5, %c0_6] : memref<8x256xf32, #tpu.memory_space<vmem>>, vector<8x256xf32>
    %c0_7 = arith.constant 0 : index
    %c0_8 = arith.constant 0 : index
    %c0_9 = arith.constant 0 : index
    %4 = vector.load %arg1[%c0_7, %c0_8, %c0_9] : memref<1x32x16xf32, #tpu.memory_space<vmem>>, vector<1x32x16xf32>
    %5 = vector.shape_cast %4 : vector<1x32x16xf32> to vector<32x16xf32>
    %c0_10 = arith.constant 0 : index
    %c0_11 = arith.constant 0 : index
    %c0_12 = arith.constant 0 : index
    %6 = vector.load %arg2[%c0_10, %c0_11, %c0_12] : memref<1x8x24xf32, #tpu.memory_space<vmem>>, vector<1x8x24xf32>
    %7 = vector.shape_cast %6 : vector<1x8x24xf32> to vector<8x24xf32>
    %c0_13 = arith.constant 0 : index
    %c0_14 = arith.constant 0 : index
    %c0_15 = arith.constant 0 : index
    %8 = vector.load %arg3[%c0_13, %c0_14, %c0_15] : memref<1x1x16xi32, #tpu.memory_space<vmem>>, vector<1x1x16xi32>
    %9 = vector.shape_cast %8 : vector<1x1x16xi32> to vector<1x16xi32>
    %cst = arith.constant dense<0.000000e+00> : vector<32x16xf32>
    %10 = tpu.matmul %0, %5, %cst {dimension_numbers = #tpu.dot_dimension_numbers<[1], [0], [0], [1], [0, 0, 1, 1], [], []>} : vector<32x32xf32>, vector<32x16xf32>, vector<32x16xf32> -> vector<32x16xf32>
    %cst_16 = arith.constant dense<0.000000e+00> : vector<8x32xf32>
    %11 = tpu.matmul %7, %1, %cst_16 {dimension_numbers = #tpu.dot_dimension_numbers<[1], [0], [0], [1], [0, 0, 1, 1], [], []>} : vector<8x24xf32>, vector<24x32xf32>, vector<8x32xf32> -> vector<8x32xf32>
    %12 = vector.broadcast %2 : vector<1x32xf32> to vector<8x32xf32>
    %13 = arith.addf %11, %12 : vector<8x32xf32>
    %14 = vector.shape_cast %10 : vector<32x16xf32> to vector<1x32x16xf32>
    %15 = vector.shape_cast %13 : vector<8x32xf32> to vector<8x32x1xf32>
    %16 = vector.broadcast %14 : vector<1x32x16xf32> to vector<8x32x16xf32>
    %17 = vector.broadcast %15 : vector<8x32x1xf32> to vector<8x32x16xf32>
    %18 = arith.addf %16, %17 : vector<8x32x16xf32>
    %19 = math.tanh %18 : vector<8x32x16xf32>
    %20 = vector.shape_cast %19 : vector<8x32x16xf32> to vector<256x16xf32>
    %cst_17 = arith.constant dense<0.000000e+00> : vector<8x16xf32>
    %21 = tpu.matmul %3, %20, %cst_17 {dimension_numbers = #tpu.dot_dimension_numbers<[1], [0], [0], [1], [0, 0, 1, 1], [], []>} : vector<8x256xf32>, vector<256x16xf32>, vector<8x16xf32> -> vector<8x16xf32>
    %c0_i32 = arith.constant 0 : i32
    %22 = vector.broadcast %c0_i32 : i32 to vector<1x16xi32>
    %23 = arith.cmpi ne, %9, %22 : vector<1x16xi32>
    %cst_18 = arith.constant -1.000000e+09 : f32
    %24 = vector.shape_cast %23 : vector<1x16xi1> to vector<1x16xi1>
    %25 = vector.broadcast %24 : vector<1x16xi1> to vector<8x16xi1>
    %26 = vector.broadcast %cst_18 : f32 to vector<8x16xf32>
    %27 = arith.select %25, %21, %26 : vector<8x16xi1>, vector<8x16xf32>
    %cst_19 = arith.constant dense<0xFF800000> : vector<8xf32>
    %28 = vector.multi_reduction <maximumf>, %27, %cst_19 [1] : vector<8x16xf32> to vector<8xf32>
    %29 = vector.shape_cast %28 : vector<8xf32> to vector<8x1xf32>
    %30 = vector.broadcast %29 : vector<8x1xf32> to vector<8x16xf32>
    %31 = arith.subf %27, %30 : vector<8x16xf32>
    %32 = math.exp %31 : vector<8x16xf32>
    %cst_20 = arith.constant dense<0.000000e+00> : vector<8xf32>
    %33 = vector.multi_reduction <add>, %32, %cst_20 [1] : vector<8x16xf32> to vector<8xf32>
    %34 = vector.shape_cast %33 : vector<8xf32> to vector<8x1xf32>
    %35 = tpu.reciprocal %34 : vector<8x1xf32> -> vector<8x1xf32>
    %36 = vector.broadcast %35 : vector<8x1xf32> to vector<8x16xf32>
    %37 = arith.mulf %32, %36 : vector<8x16xf32>
    %cst_21 = arith.constant dense<0.000000e+00> : vector<8x32xf32>
    %38 = tpu.matmul %37, %5, %cst_21 {dimension_numbers = #tpu.dot_dimension_numbers<[1], [1], [0], [0], [0, 0, 1, 0], [], []>} : vector<8x16xf32>, vector<32x16xf32>, vector<8x32xf32> -> vector<8x32xf32>
    %c0_22 = arith.constant 0 : index
    %c0_23 = arith.constant 0 : index
    %c0_24 = arith.constant 0 : index
    %39 = vector.load %arg8[%c0_22, %c0_23, %c0_24] : memref<1x8x32xf32, #tpu.memory_space<vmem>>, vector<1x8x32xf32>
    %40 = vector.shape_cast %39 : vector<1x8x32xf32> to vector<8x32xf32>
    %41 = vector.shape_cast %38 : vector<8x32xf32> to vector<1x8x32xf32>
    tpu.vector_store %arg8[%c0_22, %c0_23, %c0_24], %41 {strides = array<i32>} : memref<1x8x32xf32, #tpu.memory_space<vmem>>, vector<1x8x32xf32>,
    return
  }
  func.func @transform_0(%arg0: i32) -> (i32, i32, i32) {
    %c0_i32 = arith.constant 0 : i32
    %c0_i32_0 = arith.constant 0 : i32
    %c0_i32_1 = arith.constant 0 : i32
    return %arg0, %c0_i32, %c0_i32_0 : i32, i32, i32
  }
  func.func @transform_1(%arg0: i32) -> (i32, i32, i32) {
    %c0_i32 = arith.constant 0 : i32
    %c0_i32_0 = arith.constant 0 : i32
    %c0_i32_1 = arith.constant 0 : i32
    return %arg0, %c0_i32, %c0_i32_0 : i32, i32, i32
  }
  func.func @transform_2(%arg0: i32) -> (i32, i32, i32) {
    %c0_i32 = arith.constant 0 : i32
    %c0_i32_0 = arith.constant 0 : i32
    %c0_i32_1 = arith.constant 0 : i32
    return %arg0, %c0_i32, %c0_i32_0 : i32, i32, i32
  }
  func.func @transform_3(%arg0: i32) -> (i32, i32) {
    %c0_i32 = arith.constant 0 : i32
    %c0_i32_0 = arith.constant 0 : i32
    %c0_i32_1 = arith.constant 0 : i32
    return %c0_i32, %c0_i32_0 : i32, i32
  }
  func.func @transform_4(%arg0: i32) -> (i32, i32) {
    %c0_i32 = arith.constant 0 : i32
    %c0_i32_0 = arith.constant 0 : i32
    %c0_i32_1 = arith.constant 0 : i32
    return %c0_i32, %c0_i32_0 : i32, i32
  }
  func.func @transform_5(%arg0: i32) -> (i32, i32) {
    %c0_i32 = arith.constant 0 : i32
    %c0_i32_0 = arith.constant 0 : i32
    %c0_i32_1 = arith.constant 0 : i32
    return %c0_i32, %c0_i32_0 : i32, i32
  }
  func.func @transform_6(%arg0: i32) -> (i32, i32) {
    %c0_i32 = arith.constant 0 : i32
    %c0_i32_0 = arith.constant 0 : i32
    %c0_i32_1 = arith.constant 0 : i32
    return %c0_i32, %c0_i32_0 : i32, i32
  }
  func.func @transform_7(%arg0: i32) -> (i32, i32, i32) {
    %c0_i32 = arith.constant 0 : i32
    %c0_i32_0 = arith.constant 0 : i32
    %c0_i32_1 = arith.constant 0 : i32
    return %arg0, %c0_i32, %c0_i32_0 : i32, i32, i32
  }
}

</mosaic_0001>

<bundles_post_ra>
// kernel: tpu_custom_call.1
= control target key start
LH: loop header
LB: loop body
LE: loop exit
PB: predicated region body
PF: predicated region fallthrough
CT: control target
= control target key end

     0   :  { %12 = vsyncpa [#allocation3], 0  ;;  %s1587_s0 = inlined_call_operand.vmem [shape: f32[2,32,16], index: 0, kind: input, shape index: {}]   ;;  %s1588_s1 = inlined_call_operand.vmem [shape: f32[2,8,24], index: 1, kind: input, shape index: {}]   ;;  %s1589_s2 = inlined_call_operand.vmem [shape: s32[2,1,16], index: 2, kind: input, shape index: {}]   ;;  %s1590_s3 = inlined_call_operand.vmem [shape: f32[32,32], index: 3, kind: input, shape index: {}]   ;;  %s1591_s4 = inlined_call_operand.vmem [shape: f32[24,32], index: 4, kind: input, shape index: {}]   ;;  %s1592_s5 = inlined_call_operand.vmem [shape: f32[1,32], index: 5, kind: input, shape index: {}]   ;;  %s1593_s6 = inlined_call_operand.vmem [shape: f32[8,256], index: 6, kind: input, shape index: {}]   ;;  %s1594_s7 = inlined_call_operand.hbm [shape: f32[2,8,32], index: 7, kind: output, shape index: {}]  }
   0x1   :  { %14 = vsyncpa [#allocation3 + $0x1], 0  ;;  %s1369_s24 = smov 0   ;;  %s1371_s25 = smov 0  }
   0x2   :  { %s1373_s26 = smov 0   ;;  %s1375_s27 = smov 0  }
   0x3 LB: > { %s1390_s28 = sadd.s32 4294967295, %s1322_s27   ;;  %s988_s29 = sadd.s32 4294967294, %s1322_s27   ;;  %s1322_s27 = sphi %s1375_s27, %s1600_s27   ;;  %s1318_s26 = sphi %s1373_s26, %s1599_s26   ;;  %s1314_s25 = sphi %s1371_s25, %s1598_s25   ;;  %s1310_s24 = sphi %s1369_s24, %s1597_s24  }
   0x4   : > { %s1394_s30 = sadd.s32 1, %s1322_s27   ;;  %s189_s8 = sadd.s32 1, %s1318_s26 }
   0x5   : > { %s186_s9 = ssub.s32 %s1322_s27, %s1394_s30  ;;  %p199_p0 = scmp.ne.s32.totalorder %s1318_s26, %s1314_s25 }
   0x6   : > { %p187_p1 = scmp.eq.s32.totalorder %s186_s9, 0  ;;  %p200_p2 = scmp.eq.s32.totalorder %s1390_s28, 1 }
   0x7   : > { %p205_p3 = scmp.ne.s32.totalorder %s1314_s25, %s1310_s24  ;;  %p206_p4 = scmp.eq.s32.totalorder %s988_s29, 1 }
   0x8   : > { %s1405_s10 = scalar_select %p187_p1, %s1318_s26, %s189_s8  }
   0x9   : > { %p1407_p5 = por %p200_p2, %p199_p0  ;;  %p1411_p6 = por %p206_p4, %p205_p3 }
   0xa   : > { %p991_p7 = scmp.ge.s32.totalorder %s1322_s27, 1  ;;  %p257_p8 = scmp.lt.s32.totalorder %s1322_s27, 3 }
   0xc   : > { %p258_p9 = pnand %p991_p7, %p257_p8 }
   0xd   : > { %p296_p10 = scmp.lt.s32.totalorder (!%p258_p9), %s1390_s28, 1  ;;  %v308_v0 = vld [vmem:[%s1590_s3] sm:$0xff] (!%p258_p9)  ;;  %vm324_vm0 = vcmask (!%p258_p9), 261120   ;;  %v313_v8 = vld [vmem:[%s1591_s4 + $0x8] sm:$0xff] (!%p258_p9)  ;;  %v1324_v11 = vmov (!%p258_p9), 0.0|0.0   ;;  %v310_v12 = vld [vmem:[%s1590_s3 + $0x10] sm:$0xff] (!%p258_p9)  ;;  %v502_v17 = vlaneseq (!%p258_p9) }
   0xe   : > { %261 = sbr.rel (%p258_p9) target bundleno = 1210 (0x4ba), region = 48  ;;  %1072 = vmatprep.mubr.msk.f32.mxu0 (!%p258_p9), %vm324_vm0, %v308_v0  ;;  %v312_v7 = vld [vmem:[%s1591_s4] sm:$0xff] (!%p258_p9)  ;;  %v309_v9 = vld [vmem:[%s1590_s3 + $0x8] sm:$0xff] (!%p258_p9)  ;;  %v311_v13 = vld [vmem:[%s1590_s3 + $0x18] sm:$0xff] (!%p258_p9)  ;;  %v1325_v14 = vmov (!%p258_p9), 0.0   ;;  %vm1326_vm1 = vmmov (!%p258_p9), 0  }
   0xf   : > { %v1107_v10 = vpack.c.bf16 (!%p258_p9), %v313_v8, %v312_v7  ;;  %v314_v15 = vld [vmem:[%s1591_s4 + $0x10] sm:$0xff] (!%p258_p9)  ;;  %vm428_vm2 = vcmask (!%p258_p9), 195584   ;;  %v1468_v20 = vshrl.u32 (!%p258_p9), %v502_v17, 7  ;;  %v1000_v23 = vld [vmem:[%s1592_s5] ss:$0 sm:$0xff] (!%p258_p9)  ;;  %v317_v43 = vld [vmem:[%s1593_s6 + $0x8] sm:$0xff] (!%p258_p9) }
  0x10   : > { %782 = vmatprep.mubr.f32.mxu1 (!%p258_p9), %v317_v43  ;;  %vm796_vm5 = vcmask (!%p258_p9), 130048   ;;  %s1008_s20 = sshll.u32 (!%p258_p9), %s1390_s28, 7 }
  0x11   : > { %v580_v24 = vsub.s32 (!%p258_p9), 4, %v1468_v20  ;;  %v504_v25 = vsub.s32 (!%p258_p9), 0, %v1468_v20  ;;  %v599_v31 = vsub.s32 (!%p258_p9), 5, %v1468_v20  ;;  %v523_v33 = vsub.s32 (!%p258_p9), 1, %v1468_v20  ;;  %vm1143_vm6 = vmpackc.low (!%p258_p9), %vm796_vm5, %vm796_vm5  ;;  %s1544_s8 = scalar_lea.hbm (!%p258_p9), %s1594_s7, %s1008_s20 }
  0x12   : > { %v618_v35 = vsub.s32 (!%p258_p9), 6, %v1468_v20  ;;  %v542_v37 = vsub.s32 (!%p258_p9), 2, %v1468_v20  ;;  %v637_v39 = vsub.s32 (!%p258_p9), 7, %v1468_v20  ;;  %v561_v41 = vsub.s32 (!%p258_p9), 3, %v1468_v20 }
  0x15   : > { %s1423_s15 = scalar_select %p296_p10, %s1390_s28, 1 }
  0x16   : > { %s1328_s28 = smov [#allocation2]  }
  0x17   : > { %s1011_s16 = sshll.u32 %s1423_s15, 5  ;;  %s995_s14 = sshll.u32 %s1423_s15, 3 }
  0x18   : > { %s300_s19 = scalar_lea.vmem %s1587_s0, %s1011_s16  ;;  %s304_s22 = scalar_lea.vmem %s1588_s1, %s995_s14 }
  0x19   : > { %v318_v1 = vld [vmem:[%s300_s19] sm:$0xff]  ;;  %v319_v2 = vld [vmem:[%s300_s19 + $0x8] sm:$0xff]  ;;  %v320_v3 = vld [vmem:[%s300_s19 + $0x10] sm:$0xff]  ;;  %s307_s18 = scalar_lea.vmem %s1589_s2, %s1423_s15  ;;  %s293_s15 = sand.u32 1, %s1314_s25  }
  0x1a   : > { %v1429_v4 = vpack.c.bf16 %v319_v2, %v318_v1  ;;  %v321_v5 = vld [vmem:[%s300_s19 + $0x18] sm:$0xff]  ;;  %v322_v16 = vld [vmem:[%s304_s22] sm:$0xff]  ;;  %s992_s19 = sshll.u32 %s293_s15, 3  ;;  %s895_s9 = scalar_lea.sflag [#allocation3], %s293_s15 }
  0x1b   : > { %v1431_v6 = vpack.c.bf16 %v321_v5, %v320_v3  ;;  %s295_s21 = scalar_lea.vmem [#allocation2], %s992_s19  ;;  %s1264_s14 = sshll.u32 %s1328_s28, 4  ;;  %s1265_s14 = int_to_ptr.vmem [resolvable:$false] %s1264_s14 }
  0x1c   : > { %1099 = vmatprep.subr.bf16.mxu0 %v1429_v4  ;;  %s908_s22 = sshll.u32 %s295_s21, 4  ;;  %s1266_s16 = scalar_lea.vmem %s1265_s14, 256  ;;  %s1546_s22 = int_to_ptr.vmem [resolvable:$true] %s908_s22 }
  0x1d   : > { %1101 = vmatpush3.bf16.msra.mxu0 %v1429_v4  ;;  %s1260_s13 = scalar_lea.vmem %s1546_s22, 128  ;;  %p1267_p0 = scmp.lt.s32.totalorder %s1546_s22, %s1265_s14 }
  0x1e   : > { %1103 = vmatprep.subr.bf16.mxu0 %v1431_v6  ;;  %p1261_p11 = scmp.ne.s32.totalorder %s1546_s22, %s1260_s13  ;;  %p1268_p1 = scmp.lt.s32.totalorder %s1266_s16, %s1260_s13 }
  0x20   : > { %p1262_p12 = pnand %p1261_p11, %p1407_p5  ;;  %p1269_p2 = por %p1268_p1, %p1267_p0 }
  0x21   : > { %1105 = vmatpush3.bf16.msra.mxu0 %v1431_v6 }
  0x22   : > { %1106 = vmatprep.subr.bf16.mxu0 %v1324_v11  ;;  %p1263_p13 = pneg %p1262_p12 }
  0x24   : > { %1073 = vmatmul.mubr.msk.f32.vlgmr.msra.gmra.mrb[0].mxu0 %vm324_vm0, %v309_v9  ;;  %p1270_p3 = pnand %p1269_p2, %p1263_p13 }
  0x25   : > { %1108 = vmatpush3.bf16.msra.mxu0 %v1107_v10  ;;  %1075 = vmatprep.mubr.msk.f32.mxu0 %vm324_vm0, %v310_v12 }
  0x26   : > { %1082 = vmatprep.subr.mxu0 %v1325_v14 }
  0x28   : > { %1076 = vmatmul.mubr.msk.f32.gmra.mrb[2].mxu0 %vm324_vm0, %v311_v13 }
  0x29   : > { %1083 = vmatpush3.msra.mxu0 %v314_v15  ;;  %1084 = vmatprep.mubr.msk.f32.mxu0 %vm1326_vm1, %v1325_v14 }
  0x2a   : > { %1141 = vmatprep.subr.bf16.mxu0 %v1324_v11 }
  0x2c   : > { %1085 = vmatmul.mubr.msk.f32.vlgmr.msra.gmra.mrb[4].mxu0 %vm428_vm2, %v322_v16 }
  0x2d   : > { %1095 = vmatprep.mubr.msk.f32.mxu0 %vm1326_vm1, %v1325_v14 }
  0x30   : > { %1144 = vmatpush3.bf16.xpose.msk.msra.mxu0 %vm1143_vm6, %v1429_v4 }
  0x31   : > { %1145 = vmatprep.subr.bf16.mxu0 %v1324_v11 }
  0x38   : > { %1148 = vmatpush3.bf16.xpose.msk.msra.mxu0 %vm1143_vm6, %v1431_v6 }
  0xf7   : > { %v1464_v18 = vpop.f32.mrb[0].mxu0 }
  0xf8   : > { %v1466_v19 = vpop.f32.mrb[1].mxu0 }
  0xfb   : > { %v1470_v21 = vpop.f32.mrb[2].mxu0 }
  0xfc   : > { %v1472_v22 = vpop.f32.mrb[3].mxu0 }
  0xff   : > { %v498_v26 = vpop.f32.mrb[4].mxu0 }
 0x100   : > { %v499_v27 = vadd.f32 %v1000_v23, %v498_v26  ;;  %v1086_v28 = vpop.f32.mrb[5].mxu0 }
 0x102   : > { %v581_v29 = vrot.slane %v499_v27, %v580_v24  ;;  %v505_v30 = vrot.slane %v499_v27, %v504_v25  ;;  %v600_v32 = vrot.slane %v499_v27, %v599_v31  ;;  %v524_v34 = vrot.slane %v499_v27, %v523_v33 }
 0x103   : > { %v619_v36 = vrot.slane %v499_v27, %v618_v35  ;;  %v543_v38 = vrot.slane %v499_v27, %v542_v37  ;;  %v638_v40 = vrot.slane %v499_v27, %v637_v39  ;;  %v562_v42 = vrot.slane %v499_v27, %v561_v41 }
 0x104   : > { %583 = vbcast.lane.b32.xlu0 %v581_v29, 256  ;;  %507 = vbcast.lane.b32.xlu1 %v505_v30, 256 }
 0x108   : > { %587 = vbcast.lane.b32.xlu0 %v581_v29, 264  ;;  %511 = vbcast.lane.b32.xlu1 %v505_v30, 264 }
 0x10c   : > { %591 = vbcast.lane.b32.xlu0 %v581_v29, 272  ;;  %595 = vbcast.lane.b32.xlu1 %v581_v29, 280 }
 0x110   : > { %515 = vbcast.lane.b32.xlu0 %v505_v30, 272  ;;  %519 = vbcast.lane.b32.xlu1 %v505_v30, 280 }
 0x114   : > { %602 = vbcast.lane.b32.xlu0 %v600_v32, 256  ;;  %606 = vbcast.lane.b32.xlu1 %v600_v32, 264 }
 0x118   : > { %526 = vbcast.lane.b32.xlu0 %v524_v34, 256  ;;  %530 = vbcast.lane.b32.xlu1 %v524_v34, 264 }
 0x11c   : > { %610 = vbcast.lane.b32.xlu0 %v600_v32, 272  ;;  %614 = vbcast.lane.b32.xlu1 %v600_v32, 280 }
 0x120   : > { %534 = vbcast.lane.b32.xlu0 %v524_v34, 272  ;;  %538 = vbcast.lane.b32.xlu1 %v524_v34, 280 }
 0x124   : > { %621 = vbcast.lane.b32.xlu0 %v619_v36, 256  ;;  %625 = vbcast.lane.b32.xlu1 %v619_v36, 264 }
 0x128   : > { %545 = vbcast.lane.b32.xlu0 %v543_v38, 256  ;;  %549 = vbcast.lane.b32.xlu1 %v543_v38, 264 }
 0x12c   : > { %629 = vbcast.lane.b32.xlu0 %v619_v36, 272  ;;  %633 = vbcast.lane.b32.xlu1 %v619_v36, 280 }
 0x130   : > { %553 = vbcast.lane.b32.xlu0 %v543_v38, 272  ;;  %557 = vbcast.lane.b32.xlu1 %v543_v38, 280 }
 0x134   : > { %640 = vbcast.lane.b32.xlu0 %v638_v40, 256  ;;  %644 = vbcast.lane.b32.xlu1 %v638_v40, 264 }
 0x138   : > { %564 = vbcast.lane.b32.xlu0 %v562_v42, 256  ;;  %568 = vbcast.lane.b32.xlu1 %v562_v42, 264 }
 0x13c   : > { %648 = vbcast.lane.b32.xlu0 %v638_v40, 272  ;;  %652 = vbcast.lane.b32.xlu1 %v638_v40, 280 }
 0x140   : > { %572 = vbcast.lane.b32.xlu0 %v562_v42, 272  ;;  %576 = vbcast.lane.b32.xlu1 %v562_v42, 280 }
 0x176   : > { %v584_v44 = vpop.permute.xlu0 %583  ;;  %v508_v45 = vpop.permute.xlu1 %507 }
 0x177   : > { %v670_v46 = vadd.f32 %v584_v44, %v1466_v19  ;;  %v654_v47 = vadd.f32 %v508_v45, %v1466_v19 }
 0x179   : > { %1192 = vtanh.f32 %v670_v46 }
 0x17a   : > { %v588_v48 = vpop.permute.xlu0 %587  ;;  %v512_v49 = vpop.permute.xlu1 %511  ;;  %1194 = vtanh.f32 %v654_v47 }
 0x17b   : > { %v671_v50 = vadd.f32 %v1464_v18, %v588_v48  ;;  %v655_v51 = vadd.f32 %v1464_v18, %v512_v49 }
 0x17d   : > { %1196 = vtanh.f32 %v671_v50 }
 0x17e   : > { %1198 = vtanh.f32 %v655_v51  ;;  %v592_v52 = vpop.permute.xlu0 %591  ;;  %v596_v53 = vpop.permute.xlu1 %595 }
 0x17f   : > { %v672_v54 = vadd.f32 %v592_v52, %v1472_v22  ;;  %v673_v55 = vadd.f32 %v1470_v21, %v596_v53 }
 0x181   : > { %1200 = vtanh.f32 %v672_v54 }
 0x182   : > { %1202 = vtanh.f32 %v673_v55  ;;  %v516_v56 = vpop.permute.xlu0 %515  ;;  %v520_v57 = vpop.permute.xlu1 %519 }
 0x183   : > { %v656_v58 = vadd.f32 %v516_v56, %v1472_v22  ;;  %v657_v59 = vadd.f32 %v1470_v21, %v520_v57  ;;  %v1193_v60 = vpop.eup %1192 }
 0x184   : > { %v1195_v61 = vpop.eup %1194 }
 0x185   : > { %1204 = vtanh.f32 %v656_v58 }
 0x186   : > { %1206 = vtanh.f32 %v657_v59  ;;  %v603_v62 = vpop.permute.xlu0 %602  ;;  %v607_v63 = vpop.permute.xlu1 %606 }
 0x187   : > { %v1197_v0 = vpop.eup %1196  ;;  %v674_v1 = vadd.f32 %v603_v62, %v1466_v19  ;;  %v675_v2 = vadd.f32 %v1464_v18, %v607_v63 }
 0x188   : > { %v1199_v3 = vpop.eup %1198  ;;  %v1109_v5 = vpack.c.bf16 %v1197_v0, %v1193_v60 }
 0x189   : > { %1208 = vtanh.f32 %v674_v1  ;;  %v1111_v7 = vpack.c.bf16 %v1199_v3, %v1195_v61 }
 0x18a   : > { %1210 = vtanh.f32 %v675_v2  ;;  %1110 = vmatprep.subr.bf16.mxu1 %v1109_v5  ;;  %v527_v8 = vpop.permute.xlu0 %526  ;;  %v531_v9 = vpop.permute.xlu1 %530 }
 0x18b   : > { %v1201_v10 = vpop.eup %1200  ;;  %v658_v12 = vadd.f32 %v527_v8, %v1466_v19  ;;  %v659_v13 = vadd.f32 %v1464_v18, %v531_v9  ;;  %1112 = vmatpush3.bf16.msra.mxu1 %v1111_v7 }
 0x18c   : > { %v1203_v14 = vpop.eup %1202 }
 0x18d   : > { %1212 = vtanh.f32 %v658_v12  ;;  %v1113_v15 = vpack.c.bf16 %v1203_v14, %v1201_v10 }
 0x18e   : > { %1214 = vtanh.f32 %v659_v13  ;;  %v611_v16 = vpop.permute.xlu0 %610  ;;  %v615_v17 = vpop.permute.xlu1 %614 }
 0x18f   : > { %v1205_v23 = vpop.eup %1204  ;;  %v676_v24 = vadd.f32 %v611_v16, %v1472_v22  ;;  %1114 = vmatprep.subr.bf16.mxu1 %v1113_v15  ;;  %v677_v26 = vadd.f32 %v1470_v21, %v615_v17 }
 0x190   : > { %v1207_v27 = vpop.eup %1206 }
 0x191   : > { %1216 = vtanh.f32 %v676_v24  ;;  %v1115_v28 = vpack.c.bf16 %v1207_v27, %v1205_v23 }
 0x192   : > { %1218 = vtanh.f32 %v677_v26  ;;  %v535_v29 = vpop.permute.xlu0 %534  ;;  %v539_v30 = vpop.permute.xlu1 %538 }
 0x193   : > { %v1209_v31 = vpop.eup %1208  ;;  %v660_v32 = vadd.f32 %v535_v29, %v1472_v22  ;;  %1116 = vmatpush3.bf16.msra.mxu1 %v1115_v28  ;;  %v661_v33 = vadd.f32 %v1470_v21, %v539_v30 }
 0x194   : > { %v1211_v34 = vpop.eup %1210 }
 0x195   : > { %1220 = vtanh.f32 %v660_v32  ;;  %v1117_v35 = vpack.c.bf16 %v1211_v34, %v1209_v31 }
 0x196   : > { %1222 = vtanh.f32 %v661_v33  ;;  %v622_v36 = vpop.permute.xlu0 %621  ;;  %v626_v37 = vpop.permute.xlu1 %625 }
 0x197   : > { %v1213_v38 = vpop.eup %1212  ;;  %v678_v39 = vadd.f32 %v622_v36, %v1466_v19  ;;  %1118 = vmatprep.subr.bf16.mxu1 %v1117_v35  ;;  %v679_v40 = vadd.f32 %v1464_v18, %v626_v37 }
 0x198   : > { %v1215_v41 = vpop.eup %1214 }
 0x199   : > { %1224 = vtanh.f32 %v678_v39  ;;  %v1119_v42 = vpack.c.bf16 %v1215_v41, %v1213_v38 }
 0x19a   : > { %1226 = vtanh.f32 %v679_v40  ;;  %v546_v43 = vpop.permute.xlu0 %545  ;;  %v550_v44 = vpop.permute.xlu1 %549 }
 0x19b   : > { %v1217_v45 = vpop.eup %1216  ;;  %v662_v46 = vadd.f32 %v546_v43, %v1466_v19  ;;  %1120 = vmatpush3.bf16.msra.mxu1 %v1119_v42  ;;  %v663_v47 = vadd.f32 %v1464_v18, %v550_v44  ;;  %v323_v43 = vld [vmem:[%s307_s18] sm:$0x1]  ;;  %v1327_v44 = vmov 0  }
 0x19c   : > { %v1219_v48 = vpop.eup %1218  ;;  %vm788_vm3 = vcmp.ne.s32.totalorder %v323_v43, 0 }
 0x19d   : > { %1228 = vtanh.f32 %v662_v46  ;;  %v1121_v49 = vpack.c.bf16 %v1219_v48, %v1217_v45  ;;  %v789_v45 = vsel %vm788_vm3, 1, %v1327_v44 }
 0x19e   : > { %1230 = vtanh.f32 %v663_v47  ;;  %v630_v50 = vpop.permute.xlu0 %629  ;;  %v634_v51 = vpop.permute.xlu1 %633  ;;  %v793_v46 = vrot.slane %v789_v45, %v504_v25 }
 0x19f   : > { %v1221_v52 = vpop.eup %1220  ;;  %v680_v53 = vadd.f32 %v630_v50, %v1472_v22  ;;  %1122 = vmatprep.subr.bf16.mxu1 %v1121_v49  ;;  %v681_v54 = vadd.f32 %v1470_v21, %v634_v51 }
 0x1a0   : > { %v1223_v55 = vpop.eup %1222  ;;  %vm794_vm4 = vcmp.eq.s32.totalorder %v793_v46, 1 }
 0x1a1   : > { %1232 = vtanh.f32 %v680_v53  ;;  %v1123_v56 = vpack.c.bf16 %v1223_v55, %v1221_v52 }
 0x1a2   : > { %1234 = vtanh.f32 %v681_v54  ;;  %v554_v57 = vpop.permute.xlu0 %553  ;;  %v558_v58 = vpop.permute.xlu1 %557 }
 0x1a3   : > { %v1225_v59 = vpop.eup %1224  ;;  %v664_v60 = vadd.f32 %v554_v57, %v1472_v22  ;;  %1124 = vmatpush3.bf16.msra.mxu1 %v1123_v56  ;;  %v665_v61 = vadd.f32 %v1470_v21, %v558_v58 }
 0x1a4   : > { %v1227_v62 = vpop.eup %1226 }
 0x1a5   : > { %1236 = vtanh.f32 %v664_v60  ;;  %v1125_v63 = vpack.c.bf16 %v1227_v62, %v1225_v59 }
 0x1a6   : > { %1238 = vtanh.f32 %v665_v61  ;;  %v641_v0 = vpop.permute.xlu0 %640  ;;  %v645_v1 = vpop.permute.xlu1 %644 }
 0x1a7   : > { %v1229_v2 = vpop.eup %1228  ;;  %v682_v3 = vadd.f32 %v641_v0, %v1466_v19  ;;  %1126 = vmatprep.subr.bf16.mxu1 %v1125_v63  ;;  %v683_v5 = vadd.f32 %v1464_v18, %v645_v1 }
 0x1a8   : > { %v1231_v7 = vpop.eup %1230 }
 0x1a9   : > { %1240 = vtanh.f32 %v682_v3  ;;  %v1127_v8 = vpack.c.bf16 %v1231_v7, %v1229_v2 }
 0x1aa   : > { %1242 = vtanh.f32 %v683_v5  ;;  %v565_v9 = vpop.permute.xlu0 %564  ;;  %v569_v10 = vpop.permute.xlu1 %568 }
 0x1ab   : > { %v1233_v12 = vpop.eup %1232  ;;  %v666_v13 = vadd.f32 %v565_v9, %v1466_v19  ;;  %1128 = vmatpush3.bf16.msra.mxu1 %v1127_v8  ;;  %v667_v14 = vadd.f32 %v1464_v18, %v569_v10 }
 0x1ac   : > { %v1235_v15 = vpop.eup %1234 }
 0x1ad   : > { %1244 = vtanh.f32 %v666_v13  ;;  %v1129_v16 = vpack.c.bf16 %v1235_v15, %v1233_v12 }
 0x1ae   : > { %1246 = vtanh.f32 %v667_v14  ;;  %v649_v17 = vpop.permute.xlu0 %648  ;;  %v653_v23 = vpop.permute.xlu1 %652 }
 0x1af   : > { %v1237_v24 = vpop.eup %1236  ;;  %v684_v26 = vadd.f32 %v649_v17, %v1472_v22  ;;  %1130 = vmatprep.subr.bf16.mxu1 %v1129_v16  ;;  %v685_v27 = vadd.f32 %v1470_v21, %v653_v23 }
 0x1b0   : > { %v1239_v28 = vpop.eup %1238 }
 0x1b1   : > { %1248 = vtanh.f32 %v684_v26  ;;  %v1131_v29 = vpack.c.bf16 %v1239_v28, %v1237_v24 }
 0x1b2   : > { %1250 = vtanh.f32 %v685_v27  ;;  %v573_v19 = vpop.permute.xlu0 %572  ;;  %v577_v30 = vpop.permute.xlu1 %576 }
 0x1b3   : > { %v1241_v31 = vpop.eup %1240  ;;  %v668_v18 = vadd.f32 %v573_v19, %v1472_v22  ;;  %1132 = vmatpush3.bf16.msra.mxu1 %v1131_v29  ;;  %v669_v32 = vadd.f32 %v1470_v21, %v577_v30  ;;  %v316_v21 = vld [vmem:[%s1593_s6] sm:$0xff] }
 0x1b4   : > { %v1243_v33 = vpop.eup %1242 }
 0x1b5   : > { %1252 = vtanh.f32 %v668_v18  ;;  %v1133_v34 = vpack.c.bf16 %v1243_v33, %v1241_v31 }
 0x1b6   : > { %1254 = vtanh.f32 %v669_v32 }
 0x1b7   : > { %v1245_v35 = vpop.eup %1244  ;;  %1134 = vmatprep.subr.bf16.mxu1 %v1133_v34 }
 0x1b8   : > { %v1247_v36 = vpop.eup %1246 }
 0x1b9   : > { %v1135_v37 = vpack.c.bf16 %v1247_v36, %v1245_v35 }
 0x1bb   : > { %v1249_v38 = vpop.eup %1248  ;;  %1136 = vmatpush3.bf16.msra.mxu1 %v1135_v37 }
 0x1bc   : > { %v1251_v39 = vpop.eup %1250 }
 0x1bd   : > { %v1137_v40 = vpack.c.bf16 %v1251_v39, %v1249_v38 }
 0x1bf   : > { %v1253_v41 = vpop.eup %1252  ;;  %1138 = vmatprep.subr.bf16.mxu1 %v1137_v40 }
 0x1c0   : > { %v1255_v42 = vpop.eup %1254 }
 0x1c1   : > { %v1139_v22 = vpack.c.bf16 %v1255_v42, %v1253_v41 }
 0x1c3   : > { %1140 = vmatpush3.bf16.msra.mxu1 %v1139_v22 }
 0x1c6   : > { %783 = vmatmul.mubr.f32.vlgmr.msra.gmra.mrb[0].mxu1 %v316_v21 }
 0x299   : > { %v1056_v47 = vpop.f32.mrb[0].mxu1 }
 0x29a   : > { %v1057_v48 = vpop.f32.mrb[1].mxu1 }
 0x29b   : > { %v1058_v49 = vadd.f32 %v1057_v48, %v1056_v47 }
 0x29d   : > { %v795_v50 = vsel %vm794_vm4, %v1058_v49, -1e+09 }
 0x29e   : > { %v797_v51 = vsel %vm796_vm5, %v795_v50, -inf }
 0x29f   : > { %798 = vmax.xlane.f32.xlu0 %v797_v51 }
 0x32c   : > { %v799_v20 = vpop.xlane.xlu0 %798 }
 0x32d   : > { %v800_v25 = vsub.f32 %v795_v50, %v799_v20 }
 0x32f   : > { %v801_v52 = vmul.f32 1.442695, %v800_v25 }
 0x331   : > { %1256 = vpow2.f32 %v801_v52 }
 0x33b   : > { %v1257_v53 = vpop.eup %1256 }
 0x33c   : > { %v803_v54 = vsel %vm796_vm5, %v1257_v53, 0.0 }
 0x33d   : > { %804 = vadd.xlane.f32.xlu1 %v803_v54 }
 0x3ca   : > { %v805_v55 = vpop.xlane.xlu1 %804 }
 0x3cb   : > { %1258 = vrcp.f32 %v805_v55 }
 0x3d5   : > { %v1259_v56 = vpop.eup %1258 }
 0x3d6   : > { %v807_v57 = vmul.f32 %v1259_v56, %v1257_v53 }
 0x3d8   : > { %1096 = vmatmul.mubr.msk.f32.vlgmr.msra.gmra.mrb[6].mxu0 %vm796_vm5, %v807_v57 }
 0x4ab   : > { %v889_v4 = vpop.f32.mrb[6].mxu0 }
 0x4ac   : > { %893 = vst.msk [vmem:[%s295_s21] sm:$0xff] %vm324_vm0, %v889_v4  ;;  %v1097_v6 = vpop.f32.mrb[7].mxu0 }
 0x4ad   : > { %1273 = shalt.err (!%p1270_p3)
}
 0x4ae   : > { %s1274_s17 = scalar_lea.hbm %s1544_s8, 128  ;;  %s1278_s19 = scalar_lea.hbm %s1594_s7, 256 }
 0x4af   : > { %p1275_p4 = scmp.ne.s32.totalorder %s1544_s8, %s1274_s17  ;;  %p1279_p9 = scmp.lt.u32.totalorder %s1544_s8, %s1594_s7 }
 0x4b0   : > { %p1280_p10 = scmp.lt.u32.totalorder %s1278_s19, %s1274_s17  ;;  %p1282_p12 = scmp.lt.u32.totalorder %s1274_s17, %s1544_s8 }
 0x4b1   : > { %p1276_p7 = pnand %p1275_p4, %p1407_p5 }
 0x4b2   : > { %p1281_p11 = por %p1280_p10, %p1279_p9 }
 0x4b3   : > { %p1277_p8 = pneg %p1276_p7 }
 0x4b4   : > { %p1283_p13 = por %p1282_p12, %p1281_p11 }
 0x4b6   : > { %p1284_p0 = pnand %p1283_p13, %p1277_p8 }
 0x4b8   : > { %1287 = shalt.err (!%p1284_p0)
}
 0x4b9   : > { %1149 = dma.vmem_to_hbm [thread:$0]  (%p1407_p5), %s1546_s22, 128, %s1544_s8, %s895_s9  }
 0x4ba PF: > { %p1155_p1 = scmp.ge.s32.totalorder %s1322_s27, 2  ;;  %s920_s23 = sand.u32 1, %s1310_s24  }
 0x4bb   : > { %s921_s29 = scalar_lea.sflag [#allocation3], %s920_s23 }
 0x4bc   : > { %p1152_p2 = pnand %p1155_p1, %p1411_p6 }
 0x4be   : > { %1305 = dma.done.wait (!%p1152_p2), %s921_s29, 128  }
 0x4bf   : > { %1307 = vsyncadd (!%p1152_p2), %s921_s29, 4294967168  ;;  %p17_p3 = scmp.ge.s32.totalorder %s1394_s30, 4   ;;  %s1597_s24 = smov %s1314_s25 }
 0x4c0   : > { %s1598_s25 = smov %s1318_s26  ;;  %s1599_s26 = smov %s1405_s10 }
 0x4c1   : > { %s1600_s27 = smov %s1394_s30  ;;  %19 = sbr.rel (!%p17_p3) target bundleno = 3 (0x3), region = 89 }
 0x4c8   :  { %926 = vsyncpa [#allocation3], 1 }
 0x4c9   :  { %928 = vsyncpa [#allocation3 + $0x1], 1 }

</bundles_post_ra>
